<compile_context>
chip_gen: v6e
topology: v6e:2x2x1
jax: 0.10.0
libtpu: 0.0.40
codegen_flags: <defaults>
</compile_context>

<pallas_src>
import functools

import jax
import jax.numpy as jnp
from jax import lax
from jax.experimental import pallas as pl
from jax.experimental.pallas import tpu as pltpu

LANES = 128
SUBLANES = 8
MAX_BLOCK_ROWS = 2048  # (2048, 128) f32 block = 1 MiB per input per buffer


def _focal_loss_kernel(pred_ref, tgt_ref, out_ref, *, alpha, gamma,
                       block_rows, blocks_per_split, full_rows, rem,
                       needs_mask):
    s = pl.program_id(0)  # split (parallel -> second TC on v7x)
    j = pl.program_id(1)  # block within split (reduction axis)

    @pl.when(j == 0)
    def _init():
        out_ref[...] = jnp.zeros_like(out_ref)

    x = pred_ref[...].astype(jnp.float32)
    t = tgt_ref[...].astype(jnp.float32)

    # Numerically-stable BCE with logits (matches
    # F.binary_cross_entropy_with_logits):  max(x,0) - x*t + log1p(exp(-|x|))
    bce = jnp.maximum(x, 0.0) - x * t + jnp.log1p(jnp.exp(-jnp.abs(x)))
    pt = jnp.exp(-bce)
    q = 1.0 - pt

    # (1 - pt) ** gamma : integer gamma -> repeated multiply (VPU), no EUP pow.
    g = float(gamma)
    if g.is_integer() and g >= 0:
        gi = int(g)
        if gi == 0:
            mod = jnp.ones_like(q)
        else:
            mod = q
            for _ in range(gi - 1):
                mod = mod * q
    else:
        mod = q ** g

    f_loss = alpha * mod * bce

    def _accumulate(v):
        # Per-(sublane, lane) partial sums: (8,128)-tile-aligned reshape, then
        # pure vreg adds on the VPU.  Final cross-lane reduce is in the wrapper.
        out_ref[...] += jnp.sum(
            v.reshape(block_rows // SUBLANES, SUBLANES, LANES), axis=0)[None]

    if not needs_mask:
        _accumulate(f_loss)
    else:
        # Only blocks that overlap the ragged tail (or phantom blocks of the
        # second split) pay for the iota/compare/select mask.  All other
        # blocks take the mask-free fast path.
        row0 = (s * blocks_per_split + j) * block_rows
        is_clean = (row0 + block_rows) <= full_rows

        @pl.when(is_clean)
        def _fast():
            _accumulate(f_loss)

        @pl.when(jnp.logical_not(is_clean))
        def _tail():
            row_ids = row0 + lax.broadcasted_iota(
                jnp.int32, (block_rows, LANES), 0)
            if rem == 0:
                valid = row_ids < full_rows
            else:
                lane_ids = lax.broadcasted_iota(
                    jnp.int32, (block_rows, LANES), 1)
                valid = (row_ids < full_rows) | (
                    (row_ids == full_rows) & (lane_ids < rem))
            _accumulate(jnp.where(valid, f_loss, 0.0))


def focal_loss(pred, targets, alpha=0.25, gamma=2):
    """Pallas TPU focal loss. pred/targets: any matching shape (e.g. NCHW logits)."""
    assert pred.shape == targets.shape
    n_elem = pred.size

    # Flatten (free for contiguous inputs); only a tiny (<128 elem) pad when
    # the element count is not lane-aligned.  Padded / out-of-bounds elements
    # are masked in-kernel, so their value is irrelevant.
    flat_p = pred.reshape(-1)
    flat_t = targets.reshape(-1)
    pad = (-n_elem) % LANES
    if pad:
        flat_p = jnp.pad(flat_p, (0, pad))
        flat_t = jnp.pad(flat_t, (0, pad))
    rows = flat_p.size // LANES
    p2 = flat_p.reshape(rows, LANES)
    t2 = flat_t.reshape(rows, LANES)

    block_rows = min(MAX_BLOCK_ROWS,
                     ((rows + SUBLANES - 1) // SUBLANES) * SUBLANES)
    total_blocks = pl.cdiv(rows, block_rows)
    num_splits = 2 if total_blocks > 1 else 1   # use both TCs on v7x
    blocks_per_split = pl.cdiv(total_blocks, num_splits)

    needs_mask = (n_elem % LANES != 0) or (rows % block_rows != 0) or \
                 (num_splits * blocks_per_split != total_blocks)

    def in_index_map(s, j):
        blk = s * blocks_per_split + j
        # Clamp phantom blocks (second split when total_blocks is odd / tiny);
        # their contribution is zeroed by the in-kernel mask.
        return (jnp.minimum(blk, total_blocks - 1), 0)

    tile_spec = pl.BlockSpec((block_rows, LANES), in_index_map)

    kernel = functools.partial(
        _focal_loss_kernel,
        alpha=float(alpha), gamma=gamma,
        block_rows=block_rows, blocks_per_split=blocks_per_split,
        full_rows=n_elem // LANES, rem=n_elem % LANES,
        needs_mask=needs_mask)

    bytes_in = (p2.size * p2.dtype.itemsize) + (t2.size * t2.dtype.itemsize)
    cost = pl.CostEstimate(
        flops=12 * n_elem,
        transcendentals=3 * n_elem,
        bytes_accessed=bytes_in + num_splits * SUBLANES * LANES * 4)

    partials = pl.pallas_call(
        kernel,
        out_shape=jax.ShapeDtypeStruct((num_splits, SUBLANES, LANES),
                                       jnp.float32),
        grid_spec=pltpu.PrefetchScalarGridSpec(
            num_scalar_prefetch=0,
            grid=(num_splits, blocks_per_split),
            in_specs=[tile_spec, tile_spec],
            out_specs=pl.BlockSpec((1, SUBLANES, LANES),
                                   lambda s, j: (s, 0, 0)),
        ),
        compiler_params=pltpu.CompilerParams(
            dimension_semantics=("parallel", "arbitrary"),
            vmem_limit_bytes=32 * 1024 * 1024),
        cost_estimate=cost,
    )(p2, t2)

    return jnp.sum(partials) / n_elem


def _focal_loss_ref(pred, targets, alpha=0.25, gamma=2):
    x = pred.astype(jnp.float32)
    t = targets.astype(jnp.float32)
    bce = jnp.maximum(x, 0.0) - x * t + jnp.log1p(jnp.exp(-jnp.abs(x)))
    pt = jnp.exp(-bce)
    return jnp.mean(alpha * (1.0 - pt) ** gamma * bce)


if __name__ == "__main__":
    key = jax.random.PRNGKey(0)
    k1, k2 = jax.random.split(key)

    # Small NCHW-shaped inputs consistent with a typical detection head.
    pred = jax.random.normal(k1, (2, 4, 16, 16), dtype=jnp.float32)
    targets = (jax.random.uniform(k2, (2, 4, 16, 16)) > 0.5).astype(jnp.float32)

    out = jax.block_until_ready(focal_loss(pred, targets))
    ref = _focal_loss_ref(pred, targets)
    assert jnp.allclose(out, ref, rtol=1e-5, atol=1e-6), (out, ref)

    # Ragged shape (exercises the in-kernel iota mask / tail path).
    k3, k4 = jax.random.split(k2)
    pred2 = jax.random.normal(k3, (3, 5, 7, 11), dtype=jnp.float32)
    targets2 = (jax.random.uniform(k4, (3, 5, 7, 11)) > 0.5).astype(jnp.float32)
    out2 = jax.block_until_ready(focal_loss(pred2, targets2))
    ref2 = _focal_loss_ref(pred2, targets2)
    assert jnp.allclose(out2, ref2, rtol=1e-5, atol=1e-6), (out2, ref2)

    print("KERNEL_OK")
</pallas_src>

<mosaic_0001>
module attributes {stable_mosaic.version = 11 : i64} {
  func.func @_focal_loss_kernel(%arg0: i32, %arg1: i32, %arg2: memref<16x128xf32, #tpu.memory_space<vmem>>, %arg3: memref<16x128xf32, #tpu.memory_space<vmem>>, %arg4: memref<1x8x128xf32, #tpu.memory_space<vmem>>) attributes {dimension_semantics = [#tpu.dimension_semantics<parallel>, #tpu.dimension_semantics<arbitrary>], iteration_bounds = array<i64: 1, 1>, scalar_prefetch = 0 : i64, scratch_operands = 0 : i64, tpu.core_type = #tpu.core_type<tc>, window_params = [{transform_indices = @transform_0, window_bounds = array<i64: 16, 128>}, {transform_indices = @transform_1, window_bounds = array<i64: 16, 128>}, {transform_indices = @transform_2, window_bounds = array<i64: 1, 8, 128>}]} {
    %c0_i32 = arith.constant 0 : i32
    %0 = arith.cmpi eq, %arg1, %c0_i32 : i32
    %1 = arith.extui %0 : i1 to i32
    %c0_i32_0 = arith.constant 0 : i32
    %2 = arith.cmpi ne, %1, %c0_i32_0 : i32
    scf.if %2 {
      %cst_15 = arith.constant 0.000000e+00 : f32
      %30 = vector.broadcast %cst_15 : f32 to vector<1x8x128xf32>
      %c0_16 = arith.constant 0 : index
      %c0_17 = arith.constant 0 : index
      %c0_18 = arith.constant 0 : index
      %31 = vector.load %arg4[%c0_16, %c0_17, %c0_18] : memref<1x8x128xf32, #tpu.memory_space<vmem>>, vector<1x8x128xf32>
      tpu.vector_store %arg4[%c0_16, %c0_17, %c0_18], %30 {strides = array<i32>} : memref<1x8x128xf32, #tpu.memory_space<vmem>>, vector<1x8x128xf32>,
    } else {
    }
    %c0 = arith.constant 0 : index
    %c0_1 = arith.constant 0 : index
    %3 = vector.load %arg2[%c0, %c0_1] : memref<16x128xf32, #tpu.memory_space<vmem>>, vector<16x128xf32>
    %c0_2 = arith.constant 0 : index
    %c0_3 = arith.constant 0 : index
    %4 = vector.load %arg3[%c0_2, %c0_3] : memref<16x128xf32, #tpu.memory_space<vmem>>, vector<16x128xf32>
    %cst = arith.constant 0.000000e+00 : f32
    %5 = vector.broadcast %cst : f32 to vector<16x128xf32>
    %6 = arith.maximumf %3, %5 : vector<16x128xf32>
    %7 = arith.mulf %3, %4 : vector<16x128xf32>
    %8 = arith.subf %6, %7 : vector<16x128xf32>
    %9 = math.absf %3 : vector<16x128xf32>
    %cst_4 = arith.constant 0.000000e+00 : f32
    %10 = vector.broadcast %cst_4 : f32 to vector<16x128xf32>
    %11 = arith.subf %10, %9 : vector<16x128xf32>
    %12 = math.exp %11 : vector<16x128xf32>
    %13 = math.log1p %12 : vector<16x128xf32>
    %14 = arith.addf %8, %13 : vector<16x128xf32>
    %cst_5 = arith.constant 0.000000e+00 : f32
    %15 = vector.broadcast %cst_5 : f32 to vector<16x128xf32>
    %16 = arith.subf %15, %14 : vector<16x128xf32>
    %17 = math.exp %16 : vector<16x128xf32>
    %cst_6 = arith.constant 1.000000e+00 : f32
    %18 = vector.broadcast %cst_6 : f32 to vector<16x128xf32>
    %19 = arith.subf %18, %17 : vector<16x128xf32>
    %20 = arith.mulf %19, %19 : vector<16x128xf32>
    %cst_7 = arith.constant 2.500000e-01 : f32
    %21 = vector.broadcast %cst_7 : f32 to vector<16x128xf32>
    %22 = arith.mulf %21, %20 : vector<16x128xf32>
    %23 = arith.mulf %22, %14 : vector<16x128xf32>
    %c0_8 = arith.constant 0 : index
    %c0_9 = arith.constant 0 : index
    %c0_10 = arith.constant 0 : index
    %24 = vector.load %arg4[%c0_8, %c0_9, %c0_10] : memref<1x8x128xf32, #tpu.memory_space<vmem>>, vector<1x8x128xf32>
    %25 = vector.shape_cast %23 : vector<16x128xf32> to vector<2x8x128xf32>
    %cst_11 = arith.constant dense<0.000000e+00> : vector<8x128xf32>
    %26 = vector.multi_reduction <add>, %25, %cst_11 [0] : vector<2x8x128xf32> to vector<8x128xf32>
    %27 = vector.shape_cast %26 : vector<8x128xf32> to vector<1x8x128xf32>
    %28 = arith.addf %24, %27 : vector<1x8x128xf32>
    %c0_12 = arith.constant 0 : index
    %c0_13 = arith.constant 0 : index
    %c0_14 = arith.constant 0 : index
    %29 = vector.load %arg4[%c0_12, %c0_13, %c0_14] : memref<1x8x128xf32, #tpu.memory_space<vmem>>, vector<1x8x128xf32>
    tpu.vector_store %arg4[%c0_12, %c0_13, %c0_14], %28 {strides = array<i32>} : memref<1x8x128xf32, #tpu.memory_space<vmem>>, vector<1x8x128xf32>,
    return
  }
  func.func @transform_0(%arg0: i32, %arg1: i32) -> (i32, i32) {
    %c1_i32 = arith.constant 1 : i32
    %0 = arith.muli %arg0, %c1_i32 : i32
    %1 = arith.addi %0, %arg1 : i32
    %c0_i32 = arith.constant 0 : i32
    %2 = arith.minsi %1, %c0_i32 : i32
    %c0_i32_0 = arith.constant 0 : i32
    %c0_i32_1 = arith.constant 0 : i32
    return %2, %c0_i32_0 : i32, i32
  }
  func.func @transform_1(%arg0: i32, %arg1: i32) -> (i32, i32) {
    %c1_i32 = arith.constant 1 : i32
    %0 = arith.muli %arg0, %c1_i32 : i32
    %1 = arith.addi %0, %arg1 : i32
    %c0_i32 = arith.constant 0 : i32
    %2 = arith.minsi %1, %c0_i32 : i32
    %c0_i32_0 = arith.constant 0 : i32
    %c0_i32_1 = arith.constant 0 : i32
    return %2, %c0_i32_0 : i32, i32
  }
  func.func @transform_2(%arg0: i32, %arg1: i32) -> (i32, i32, i32) {
    %c0_i32 = arith.constant 0 : i32
    %c0_i32_0 = arith.constant 0 : i32
    %c0_i32_1 = arith.constant 0 : i32
    return %arg0, %c0_i32, %c0_i32_0 : i32, i32, i32
  }
}

</mosaic_0001>

<bundles_post_ra>
// kernel: tpu_custom_call.1
= control target key start
LH: loop header
LB: loop body
LE: loop exit
PB: predicated region body
PF: predicated region fallthrough
CT: control target
= control target key end

     0   :  { %7 = vsyncpa [#allocation3], 0  ;;  %s254_s0 = inlined_call_operand.hbm [shape: f32[16,128], index: 0, kind: input, shape index: {}]   ;;  %s255_s1 = inlined_call_operand.hbm [shape: f32[16,128], index: 1, kind: input, shape index: {}]   ;;  %s256_s2 = inlined_call_operand.hbm [shape: f32[1,8,128], index: 2, kind: output, shape index: {}]  }
   0x1   :  { %8 = vsyncpa [#allocation6], 0 }
   0x2   :  { %9 = vsyncpa [#allocation4], 0  ;;  %s225_s9 = smov [#allocation2]  }
   0x3   :  { %s21_s10 = sshll.u32 %s225_s9, 4  ;;  %s22_s10 = int_to_ptr.vmem [resolvable:$true] %s21_s10 }
   0x4   :  { %s167_s11 = scalar_lea.vmem %s22_s10, 256  ;;  %p172_p1 = scmp.lt.s32.totalorder %s22_s10, %s22_s10 }
   0x5   :  { %p168_p0 = scmp.ne.s32.totalorder %s22_s10, %s167_s11  ;;  %p173_p2 = scmp.lt.s32.totalorder %s167_s11, %s167_s11 }
   0x7   :  { %p174_p3 = por %p173_p2, %p172_p1 }
   0x9   :  { %p175_p4 = pnand %p174_p3, %p168_p0 }
   0xb   :  { %178 = shalt.err (!%p175_p4)
}
   0xc   :  { %s226_s12 = smov 128   ;;  %s227_s13 = smov 8  }
   0xd   :  { %27 = dma.hbm_to_vmem [thread:$0]  %s254_s0, 256, %s22_s10, [#allocation3], %s226_s12, %s226_s12, %s227_s13  }
   0xe   :  { %s228_s16 = smov [#allocation5]  }
   0xf   :  { %s39_s17 = sshll.u32 %s228_s16, 4  ;;  %s40_s17 = int_to_ptr.vmem [resolvable:$true] %s39_s17 }
  0x10   :  { %s187_s18 = scalar_lea.vmem %s40_s17, 256  ;;  %p192_p6 = scmp.lt.s32.totalorder %s40_s17, %s40_s17 }
  0x11   :  { %p188_p5 = scmp.ne.s32.totalorder %s40_s17, %s187_s18  ;;  %p193_p7 = scmp.lt.s32.totalorder %s187_s18, %s187_s18 }
  0x13   :  { %p194_p8 = por %p193_p7, %p192_p6 }
  0x15   :  { %p195_p9 = pnand %p194_p8, %p188_p5 }
  0x17   :  { %198 = shalt.err (!%p195_p9)
}
  0x18   :  { %45 = dma.hbm_to_vmem [thread:$0]  %s255_s1, 256, %s40_s17, [#allocation6], %s226_s12, %s226_s12, %s227_s13  }
  0x19   :  { %219 = dma.done.wait [#allocation3], 256  }
  0x1a   :  { %220 = vsyncadd [#allocation3], 4294967040 }
  0x1b   :  { %221 = dma.done.wait [#allocation6], 256  }
  0x1c   :  { %222 = vsyncadd [#allocation6], 4294967040  ;;  %v65_v0 = vld [vmem:[#allocation2] sm:$0xff]  ;;  %v66_v1 = vld [vmem:[#allocation2 + $0x8] sm:$0xff]  ;;  %s229_s0 = smov [#allocation7]  }
  0x1d   :  { %v75_v2 = vand.u32 2147483647, %v65_v0  ;;  %v76_v3 = vand.u32 2147483647, %v66_v1  ;;  %v67_v14 = vld [vmem:[#allocation5] sm:$0xff]  ;;  %v68_v15 = vld [vmem:[#allocation5 + $0x8] sm:$0xff] }
  0x1e   :  { %v69_v17 = vmax.f32 %v65_v0, 0.0  ;;  %v71_v18 = vmul.f32 %v67_v14, %v65_v0  ;;  %v70_v21 = vmax.f32 %v66_v1, 0.0  ;;  %v72_v22 = vmul.f32 %v68_v15, %v66_v1  ;;  %s127_s1 = sshll.u32 %s229_s0, 4  ;;  %s128_s1 = int_to_ptr.vmem [resolvable:$true] %s127_s1 }
  0x1f   :  { %v77_v4 = vsub.f32 0.0, %v75_v2  ;;  %v78_v5 = vsub.f32 0.0, %v76_v3  ;;  %s199_s21 = scalar_lea.vmem %s128_s1, 128  ;;  %p204_p11 = scmp.lt.s32.totalorder %s128_s1, %s128_s1 }
  0x20   :  { %v73_v26 = vsub.f32 %v69_v17, %v71_v18  ;;  %v74_v29 = vsub.f32 %v70_v21, %v72_v22  ;;  %p200_p10 = scmp.ne.s32.totalorder %s128_s1, %s199_s21  ;;  %p205_p12 = scmp.lt.s32.totalorder %s199_s21, %s199_s21 }
  0x21   :  { %v79_v6 = vmul.f32 1.442695, %v77_v4  ;;  %v81_v7 = vmul.f32 1.442695, %v78_v5 }
  0x22   :  { %p206_p13 = por %p205_p12, %p204_p11 }
  0x23   :  { %147 = vpow2.f32 %v79_v6 }
  0x24   :  { %149 = vpow2.f32 %v81_v7  ;;  %p207_p0 = pnand %p206_p13, %p200_p10 }
  0x30   :  { %v148_v8 = vpop.eup %147 }
  0x31   :  { %v150_v9 = vpop.eup %149  ;;  %v83_v10 = vadd.f32 1.0, %v148_v8  ;;  %v86_v12 = vmul.f32 -0.5, %v148_v8  ;;  %v89_v19 = vand.u32 2147483647, %v148_v8 }
  0x32   :  { %v92_v11 = vadd.f32 1.0, %v150_v9  ;;  %v95_v13 = vmul.f32 -0.5, %v150_v9  ;;  %v98_v23 = vand.u32 2147483647, %v150_v9 }
  0x33   :  { %151 = vlog2.f32 %v83_v10  ;;  %v87_v16 = vadd.f32 1.0, %v86_v12  ;;  %vm90_vm0 = vcmp.lt.f32.partialorder %v89_v19, 0.0004427343 }
  0x34   :  { %153 = vlog2.f32 %v92_v11  ;;  %v96_v20 = vadd.f32 1.0, %v95_v13  ;;  %vm99_vm1 = vcmp.lt.f32.partialorder %v98_v23, 0.0004427343 }
  0x35   :  { %v88_v24 = vmul.f32 %v148_v8, %v87_v16 }
  0x36   :  { %v97_v27 = vmul.f32 %v150_v9, %v96_v20 }
  0x40   :  { %v152_v25 = vpop.eup %151 }
  0x41   :  { %v154_v28 = vpop.eup %153  ;;  %v85_v30 = vmul.f32 0.6931472, %v152_v25 }
  0x42   :  { %v94_v31 = vmul.f32 0.6931472, %v154_v28 }
  0x43   :  { %v91_v32 = vsel %vm90_vm0, %v88_v24, %v85_v30 }
  0x44   :  { %v100_v33 = vsel %vm99_vm1, %v97_v27, %v94_v31  ;;  %v101_v34 = vadd.f32 %v91_v32, %v73_v26 }
  0x45   :  { %v102_v35 = vadd.f32 %v100_v33, %v74_v29 }
  0x46   :  { %v103_v36 = vsub.f32 0.0, %v101_v34 }
  0x47   :  { %v104_v37 = vsub.f32 0.0, %v102_v35 }
  0x48   :  { %v105_v38 = vmul.f32 1.442695, %v103_v36 }
  0x49   :  { %v107_v39 = vmul.f32 1.442695, %v104_v37 }
  0x4a   :  { %155 = vpow2.f32 %v105_v38 }
  0x4b   :  { %157 = vpow2.f32 %v107_v39 }
  0x57   :  { %v156_v40 = vpop.eup %155 }
  0x58   :  { %v158_v41 = vpop.eup %157  ;;  %v109_v42 = vsub.f32 1.0, %v156_v40 }
  0x59   :  { %v110_v43 = vsub.f32 1.0, %v158_v41 }
  0x5a   :  { %v111_v44 = vmul.f32 %v109_v42, %v109_v42 }
  0x5b   :  { %v112_v45 = vmul.f32 %v110_v43, %v110_v43 }
  0x5c   :  { %v113_v46 = vmul.f32 0.25, %v111_v44 }
  0x5d   :  { %v114_v47 = vmul.f32 0.25, %v112_v45 }
  0x5e   :  { %v115_v48 = vmul.f32 %v113_v46, %v101_v34 }
  0x5f   :  { %v116_v49 = vmul.f32 %v114_v47, %v102_v35 }
  0x61   :  { %v118_v50 = vadd.f32 %v116_v49, %v115_v48 }
  0x63   :  { %120 = vst [vmem:[#allocation7] sm:$0xff] %v118_v50 }
  0x64   :  { %210 = shalt.err (!%p207_p0)
}
  0x65   :  { %130 = dma.vmem_to_hbm [thread:$0]  %s128_s1, 128, %s256_s2, [#allocation4]  }
  0x66   :  { %223 = dma.done.wait [#allocation4], 128  }
  0x67   :  { %224 = vsyncadd [#allocation4], 4294967168 }
  0x68   :  { %134 = vsyncpa [#allocation3], 1 }
  0x69   :  { %135 = vsyncpa [#allocation6], 1 }
  0x6a   :  { %136 = vsyncpa [#allocation4], 1 }

</bundles_post_ra>
